<compile_context>
chip_gen: v7x
topology: tpu7x:2x2x1
jax: 0.10.0
libtpu: 0.0.40
codegen_flags: <defaults>
</compile_context>

<pallas_src>
import functools

import jax
import jax.numpy as jnp
from jax.experimental import pallas as pl
from jax.experimental.pallas import tpu as pltpu


def _image_proj_kernel(x_ref, w_ref, b_ref, g_ref, beta_ref, o_ref, *,
                       tokens_per_tile, dim, eps):
    # x_ref:    (B, E)        image embeddings (bf16), resident across grid
    # w_ref:    (E, tile_n)   column tile of the pre-transposed Linear weight
    # b_ref:    (1, tile_n)   Linear bias tile (f32)
    # g_ref:    (1, D)        LayerNorm gamma (f32), resident
    # beta_ref: (1, D)        LayerNorm beta  (f32), resident
    # o_ref:    (B, tile_n)   lane-dense output tile
    x = x_ref[...]
    B = x.shape[0]
    # Hoist LN affine broadcasts out of the token loop (JAX does not CSE
    # broadcast_in_dim; a static unroll would re-emit them per token).
    gamma_b = jnp.broadcast_to(g_ref[...], (B, dim))
    beta_b = jnp.broadcast_to(beta_ref[...], (B, dim))
    inv_d = jnp.float32(1.0 / dim)
    # Static unroll over the (few) tokens in this column tile. Per-token dot
    # keeps only (B, D) f32 live at a time -> low vreg pressure even on v5e.
    for t in range(tokens_per_tile):
        lo = t * dim
        yt = jnp.dot(x, w_ref[:, lo:lo + dim],
                     preferred_element_type=jnp.float32) + b_ref[:, lo:lo + dim]
        # Two-pass LayerNorm stats (subtract-mean form): the kernel is
        # weight-DMA bound, so the extra VPU pass is free and it matches
        # torch.nn.LayerNorm numerics better than E[y^2]-E[y]^2.
        mean = jnp.sum(yt, axis=-1, keepdims=True) * inv_d
        centered = yt - mean
        var = jnp.sum(centered * centered, axis=-1, keepdims=True) * inv_d
        normed = centered * jax.lax.rsqrt(var + eps)
        # lo % 128 == 0 and dim % 128 == 0 -> unmasked vst stores.
        o_ref[:, lo:lo + dim] = (normed * gamma_b + beta_b).astype(o_ref.dtype)


def prepare_image_proj_params(w_t, bias, gamma, beta, num_tokens,
                              cross_attention_dim,
                              weight_dtype=jnp.bfloat16):
    """Cast / reshape parameters ONCE at model-load time.

    Doing the f32->bf16 weight cast per forward would ~triple HBM traffic on
    the dominant tensor (read f32 + write bf16 + kernel re-read bf16).
    """
    T, D = num_tokens, cross_attention_dim
    E = w_t.shape[0]
    assert w_t.shape == (E, T * D), w_t.shape
    assert D % 128 == 0, "cross_attention_dim must be a multiple of 128 lanes"
    return {
        "w_t": w_t.astype(weight_dtype),                       # (E, T*D) bf16
        "bias": bias.reshape(1, T * D).astype(jnp.float32),    # (1, T*D) f32
        "gamma": gamma.reshape(1, D).astype(jnp.float32),      # (1, D)   f32
        "beta": beta.reshape(1, D).astype(jnp.float32),        # (1, D)   f32
    }


def _choose_tokens_per_tile(num_tokens, embed_dim, dim, weight_itemsize,
                            budget_bytes):
    """Largest divisor of T whose weight tile (E * t*D * itemsize) fits budget.

    ~8 MiB per weight tile keeps the double-buffered pipeline comfortably
    inside the default scoped VMEM on v5e (16 MiB), v6e (32 MiB) and under
    v7x's 64 MiB physical VMEM at SD/SDXL sizes, while amortizing the
    ~0.35 us per-grid-step overhead.
    """
    best = 1
    for t in range(1, num_tokens + 1):
        if num_tokens % t == 0 and embed_dim * t * dim * weight_itemsize <= budget_bytes:
            best = t
    return best


def image_proj_forward(image_embeds, params, num_tokens, cross_attention_dim,
                       *, tile_tokens=None, out_dtype=None,
                       compute_dtype=jnp.bfloat16,
                       weight_tile_budget_bytes=8 << 20):
    """Pallas implementation of ImageProjWrapper.forward(image_embeds).

    image_embeds: (B, E)
    params:       output of prepare_image_proj_params (weights already bf16)
    returns:      (B, num_tokens, cross_attention_dim)
    """
    B, E = image_embeds.shape
    T, D = num_tokens, cross_attention_dim
    N = T * D

    w = params["w_t"]
    bias2 = params["bias"]
    gamma2 = params["gamma"]
    beta2 = params["beta"]
    assert w.shape == (E, N) and bias2.shape == (1, N)
    assert gamma2.shape == (1, D) and beta2.shape == (1, D)
    assert D % 128 == 0, "cross_attention_dim must be a multiple of 128 lanes"

    if out_dtype is None:
        # bf16 is recommended if downstream cross-attention consumes bf16.
        out_dtype = image_embeds.dtype

    w_itemsize = jnp.dtype(w.dtype).itemsize
    if tile_tokens is None:
        tile_tokens = _choose_tokens_per_tile(T, E, D, w_itemsize,
                                              weight_tile_budget_bytes)
    assert T % tile_tokens == 0, (T, tile_tokens)
    tile_n = tile_tokens * D                   # multiple of D (and of 128)
    grid = (N // tile_n,)

    # (B, E) activation cast is tiny (few KiB); fine to do per call.
    x = image_embeds.astype(compute_dtype)

    kernel = functools.partial(_image_proj_kernel,
                               tokens_per_tile=tile_tokens, dim=D, eps=1e-5)

    # Rough double-buffered VMEM estimate -> scoped limit (>= default 32 MiB,
    # <= v7x's 64 MiB physical so it is safe on every generation).
    est = 2 * (E * tile_n * w_itemsize                              # weight
               + B * tile_n * jnp.dtype(out_dtype).itemsize         # output
               + 8 * tile_n * 4                                     # bias (padded)
               + B * E * jnp.dtype(compute_dtype).itemsize)         # x
    vmem_limit = int(min(64 << 20, max(32 << 20, est + (4 << 20))))

    out_flat = pl.pallas_call(
        kernel,
        out_shape=jax.ShapeDtypeStruct((B, N), out_dtype),
        grid=grid,
        in_specs=[
            pl.BlockSpec((B, E), lambda j: (0, 0)),        # x: resident
            pl.BlockSpec((E, tile_n), lambda j: (0, j)),   # weight column tile
            pl.BlockSpec((1, tile_n), lambda j: (0, j)),   # bias tile
            pl.BlockSpec((1, D), lambda j: (0, 0)),        # gamma: resident
            pl.BlockSpec((1, D), lambda j: (0, 0)),        # beta: resident
        ],
        out_specs=pl.BlockSpec((B, tile_n), lambda j: (0, j)),
        compiler_params=pltpu.CompilerParams(
            dimension_semantics=("parallel",),             # v7x: 2 TC sharding
            vmem_limit_bytes=vmem_limit),
    )(x, w, bias2, gamma2, beta2)

    # (B, T*D) -> (B, T, D): contiguous reshape == free bitcast (matches the
    # torch `reshape(-1, tokens, dim)` convention).
    return out_flat.reshape(B, T, D)


def reference_forward(image_embeds, w_t, bias, gamma, beta,
                      num_tokens, cross_attention_dim,
                      compute_dtype=jnp.bfloat16):
    B = image_embeds.shape[0]
    # Mirror the kernel's bf16 operand cast so the comparison is tight.
    x = image_embeds.astype(compute_dtype).astype(jnp.float32)
    w = w_t.astype(compute_dtype).astype(jnp.float32)
    y = x @ w + bias[None, :]
    y = y.reshape(B, num_tokens, cross_attention_dim)
    mean = jnp.mean(y, axis=-1, keepdims=True)
    var = jnp.mean(jnp.square(y - mean), axis=-1, keepdims=True)
    out = (y - mean) * jax.lax.rsqrt(var + 1e-5) * gamma + beta
    return out.astype(image_embeds.dtype)


if __name__ == "__main__":
    # Small, TPU-friendly shapes consistent with ImageProjModel's __init__.
    B = 8                      # batch
    E = 128                    # clip_embeddings_dim
    D = 128                    # cross_attention_dim
    T = 4                      # clip_extra_context_tokens

    key = jax.random.PRNGKey(0)
    kx, kw, kb, kg, kbe = jax.random.split(key, 5)

    image_embeds = jax.random.normal(kx, (B, E), dtype=jnp.float32)
    # torch Linear weight is (out, in); pre-transposed to (in, out) so the
    # kernel does x @ W_t.
    w_t = jax.random.normal(kw, (E, T * D), dtype=jnp.float32) * 0.02
    bias = jax.random.normal(kb, (T * D,), dtype=jnp.float32) * 0.01
    gamma = 1.0 + 0.05 * jax.random.normal(kg, (D,), dtype=jnp.float32)
    beta = 0.05 * jax.random.normal(kbe, (D,), dtype=jnp.float32)

    # One-time parameter prep (bf16 weight, reshaped bias/gamma/beta).
    params = prepare_image_proj_params(w_t, bias, gamma, beta, T, D)

    ref = reference_forward(image_embeds, w_t, bias, gamma, beta, T, D)

    # Default tile choice (single column tile at these demo sizes).
    out = image_proj_forward(image_embeds, params, T, D)
    out = jax.block_until_ready(out)
    assert out.shape == (B, T, D), out.shape
    assert jnp.allclose(out, ref, atol=1e-3, rtol=1e-3), "mismatch (default tile)"

    # Force a multi-step column grid to exercise the tiled/pipelined path.
    out_tiled = image_proj_forward(image_embeds, params, T, D, tile_tokens=2)
    out_tiled = jax.block_until_ready(out_tiled)
    assert jnp.allclose(out_tiled, ref, atol=1e-3, rtol=1e-3), "mismatch (tiled)"

    print("KERNEL_OK")
</pallas_src>

<mosaic_0001>
module attributes {stable_mosaic.version = 11 : i64} {
  func.func @_image_proj_kernel(%arg0: i32, %arg1: memref<8x128xbf16, #tpu.memory_space<vmem>>, %arg2: memref<128x512xbf16, #tpu.memory_space<vmem>>, %arg3: memref<1x512xf32, #tpu.memory_space<vmem>>, %arg4: memref<1x128xf32, #tpu.memory_space<vmem>>, %arg5: memref<1x128xf32, #tpu.memory_space<vmem>>, %arg6: memref<8x512xf32, #tpu.memory_space<vmem>>) attributes {dimension_semantics = [#tpu.dimension_semantics<parallel>], iteration_bounds = array<i64: 1>, scalar_prefetch = 0 : i64, scratch_operands = 0 : i64, tpu.core_type = #tpu.core_type<tc>, window_params = [{pipeline_mode = #tpu.pipeline_mode<synchronous>, transform_indices = @transform_0, window_bounds = array<i64: 8, 128>}, {transform_indices = @transform_1, window_bounds = array<i64: 128, 512>}, {transform_indices = @transform_2, window_bounds = array<i64: 1, 512>}, {pipeline_mode = #tpu.pipeline_mode<synchronous>, transform_indices = @transform_3, window_bounds = array<i64: 1, 128>}, {pipeline_mode = #tpu.pipeline_mode<synchronous>, transform_indices = @transform_4, window_bounds = array<i64: 1, 128>}, {transform_indices = @transform_5, window_bounds = array<i64: 8, 512>}]} {
    %c0 = arith.constant 0 : index
    %c0_0 = arith.constant 0 : index
    %0 = vector.load %arg1[%c0, %c0_0] : memref<8x128xbf16, #tpu.memory_space<vmem>>, vector<8x128xbf16>
    %c0_1 = arith.constant 0 : index
    %c0_2 = arith.constant 0 : index
    %1 = vector.load %arg4[%c0_1, %c0_2] : memref<1x128xf32, #tpu.memory_space<vmem>>, vector<1x128xf32>
    %2 = vector.shape_cast %1 : vector<1x128xf32> to vector<1x128xf32>
    %3 = vector.broadcast %2 : vector<1x128xf32> to vector<8x128xf32>
    %c0_3 = arith.constant 0 : index
    %c0_4 = arith.constant 0 : index
    %4 = vector.load %arg5[%c0_3, %c0_4] : memref<1x128xf32, #tpu.memory_space<vmem>>, vector<1x128xf32>
    %5 = vector.shape_cast %4 : vector<1x128xf32> to vector<1x128xf32>
    %6 = vector.broadcast %5 : vector<1x128xf32> to vector<8x128xf32>
    %c0_5 = arith.constant 0 : index
    %c0_6 = arith.constant 0 : index
    %7 = vector.load %arg2[%c0_5, %c0_6] : memref<128x512xbf16, #tpu.memory_space<vmem>>, vector<128x128xbf16>
    %cst = arith.constant dense<0.000000e+00> : vector<8x128xf32>
    %8 = tpu.matmul %0, %7, %cst {dimension_numbers = #tpu.dot_dimension_numbers<[1], [0], [0], [1], [0, 0, 1, 1], [], []>} : vector<8x128xbf16>, vector<128x128xbf16>, vector<8x128xf32> -> vector<8x128xf32>
    %c0_7 = arith.constant 0 : index
    %c0_8 = arith.constant 0 : index
    %9 = vector.load %arg3[%c0_7, %c0_8] : memref<1x512xf32, #tpu.memory_space<vmem>>, vector<1x128xf32>
    %10 = vector.broadcast %9 : vector<1x128xf32> to vector<8x128xf32>
    %11 = arith.addf %8, %10 : vector<8x128xf32>
    %cst_9 = arith.constant dense<0.000000e+00> : vector<8xf32>
    %12 = vector.multi_reduction <add>, %11, %cst_9 [1] : vector<8x128xf32> to vector<8xf32>
    %13 = vector.shape_cast %12 : vector<8xf32> to vector<8x1xf32>
    %cst_10 = arith.constant 7.812500e-03 : f32
    %14 = vector.broadcast %cst_10 : f32 to vector<8x1xf32>
    %15 = arith.mulf %13, %14 : vector<8x1xf32>
    %16 = vector.broadcast %15 : vector<8x1xf32> to vector<8x128xf32>
    %17 = arith.subf %11, %16 : vector<8x128xf32>
    %18 = arith.mulf %17, %17 : vector<8x128xf32>
    %cst_11 = arith.constant dense<0.000000e+00> : vector<8xf32>
    %19 = vector.multi_reduction <add>, %18, %cst_11 [1] : vector<8x128xf32> to vector<8xf32>
    %20 = vector.shape_cast %19 : vector<8xf32> to vector<8x1xf32>
    %cst_12 = arith.constant 7.812500e-03 : f32
    %21 = vector.broadcast %cst_12 : f32 to vector<8x1xf32>
    %22 = arith.mulf %20, %21 : vector<8x1xf32>
    %cst_13 = arith.constant 9.99999974E-6 : f32
    %23 = vector.broadcast %cst_13 : f32 to vector<8x1xf32>
    %24 = arith.addf %22, %23 : vector<8x1xf32>
    %25 = math.rsqrt %24 : vector<8x1xf32>
    %26 = vector.broadcast %25 : vector<8x1xf32> to vector<8x128xf32>
    %27 = arith.mulf %17, %26 : vector<8x128xf32>
    %28 = arith.mulf %27, %3 : vector<8x128xf32>
    %29 = arith.addf %28, %6 : vector<8x128xf32>
    %c0_14 = arith.constant 0 : index
    %c0_15 = arith.constant 0 : index
    %30 = vector.load %arg6[%c0_14, %c0_15] : memref<8x512xf32, #tpu.memory_space<vmem>>, vector<8x128xf32>
    tpu.vector_store %arg6[%c0_14, %c0_15], %29 {strides = array<i32>} : memref<8x512xf32, #tpu.memory_space<vmem>>, vector<8x128xf32>,
    %c0_16 = arith.constant 0 : index
    %c128 = arith.constant 128 : index
    %31 = vector.load %arg2[%c0_16, %c128] : memref<128x512xbf16, #tpu.memory_space<vmem>>, vector<128x128xbf16>
    %cst_17 = arith.constant dense<0.000000e+00> : vector<8x128xf32>
    %32 = tpu.matmul %0, %31, %cst_17 {dimension_numbers = #tpu.dot_dimension_numbers<[1], [0], [0], [1], [0, 0, 1, 1], [], []>} : vector<8x128xbf16>, vector<128x128xbf16>, vector<8x128xf32> -> vector<8x128xf32>
    %c0_18 = arith.constant 0 : index
    %c128_19 = arith.constant 128 : index
    %33 = vector.load %arg3[%c0_18, %c128_19] : memref<1x512xf32, #tpu.memory_space<vmem>>, vector<1x128xf32>
    %34 = vector.broadcast %33 : vector<1x128xf32> to vector<8x128xf32>
    %35 = arith.addf %32, %34 : vector<8x128xf32>
    %cst_20 = arith.constant dense<0.000000e+00> : vector<8xf32>
    %36 = vector.multi_reduction <add>, %35, %cst_20 [1] : vector<8x128xf32> to vector<8xf32>
    %37 = vector.shape_cast %36 : vector<8xf32> to vector<8x1xf32>
    %cst_21 = arith.constant 7.812500e-03 : f32
    %38 = vector.broadcast %cst_21 : f32 to vector<8x1xf32>
    %39 = arith.mulf %37, %38 : vector<8x1xf32>
    %40 = vector.broadcast %39 : vector<8x1xf32> to vector<8x128xf32>
    %41 = arith.subf %35, %40 : vector<8x128xf32>
    %42 = arith.mulf %41, %41 : vector<8x128xf32>
    %cst_22 = arith.constant dense<0.000000e+00> : vector<8xf32>
    %43 = vector.multi_reduction <add>, %42, %cst_22 [1] : vector<8x128xf32> to vector<8xf32>
    %44 = vector.shape_cast %43 : vector<8xf32> to vector<8x1xf32>
    %cst_23 = arith.constant 7.812500e-03 : f32
    %45 = vector.broadcast %cst_23 : f32 to vector<8x1xf32>
    %46 = arith.mulf %44, %45 : vector<8x1xf32>
    %cst_24 = arith.constant 9.99999974E-6 : f32
    %47 = vector.broadcast %cst_24 : f32 to vector<8x1xf32>
    %48 = arith.addf %46, %47 : vector<8x1xf32>
    %49 = math.rsqrt %48 : vector<8x1xf32>
    %50 = vector.broadcast %49 : vector<8x1xf32> to vector<8x128xf32>
    %51 = arith.mulf %41, %50 : vector<8x128xf32>
    %52 = arith.mulf %51, %3 : vector<8x128xf32>
    %53 = arith.addf %52, %6 : vector<8x128xf32>
    %c0_25 = arith.constant 0 : index
    %c128_26 = arith.constant 128 : index
    %54 = vector.load %arg6[%c0_25, %c128_26] : memref<8x512xf32, #tpu.memory_space<vmem>>, vector<8x128xf32>
    tpu.vector_store %arg6[%c0_25, %c128_26], %53 {strides = array<i32>} : memref<8x512xf32, #tpu.memory_space<vmem>>, vector<8x128xf32>,
    %c0_27 = arith.constant 0 : index
    %c256 = arith.constant 256 : index
    %55 = vector.load %arg2[%c0_27, %c256] : memref<128x512xbf16, #tpu.memory_space<vmem>>, vector<128x128xbf16>
    %cst_28 = arith.constant dense<0.000000e+00> : vector<8x128xf32>
    %56 = tpu.matmul %0, %55, %cst_28 {dimension_numbers = #tpu.dot_dimension_numbers<[1], [0], [0], [1], [0, 0, 1, 1], [], []>} : vector<8x128xbf16>, vector<128x128xbf16>, vector<8x128xf32> -> vector<8x128xf32>
    %c0_29 = arith.constant 0 : index
    %c256_30 = arith.constant 256 : index
    %57 = vector.load %arg3[%c0_29, %c256_30] : memref<1x512xf32, #tpu.memory_space<vmem>>, vector<1x128xf32>
    %58 = vector.broadcast %57 : vector<1x128xf32> to vector<8x128xf32>
    %59 = arith.addf %56, %58 : vector<8x128xf32>
    %cst_31 = arith.constant dense<0.000000e+00> : vector<8xf32>
    %60 = vector.multi_reduction <add>, %59, %cst_31 [1] : vector<8x128xf32> to vector<8xf32>
    %61 = vector.shape_cast %60 : vector<8xf32> to vector<8x1xf32>
    %cst_32 = arith.constant 7.812500e-03 : f32
    %62 = vector.broadcast %cst_32 : f32 to vector<8x1xf32>
    %63 = arith.mulf %61, %62 : vector<8x1xf32>
    %64 = vector.broadcast %63 : vector<8x1xf32> to vector<8x128xf32>
    %65 = arith.subf %59, %64 : vector<8x128xf32>
    %66 = arith.mulf %65, %65 : vector<8x128xf32>
    %cst_33 = arith.constant dense<0.000000e+00> : vector<8xf32>
    %67 = vector.multi_reduction <add>, %66, %cst_33 [1] : vector<8x128xf32> to vector<8xf32>
    %68 = vector.shape_cast %67 : vector<8xf32> to vector<8x1xf32>
    %cst_34 = arith.constant 7.812500e-03 : f32
    %69 = vector.broadcast %cst_34 : f32 to vector<8x1xf32>
    %70 = arith.mulf %68, %69 : vector<8x1xf32>
    %cst_35 = arith.constant 9.99999974E-6 : f32
    %71 = vector.broadcast %cst_35 : f32 to vector<8x1xf32>
    %72 = arith.addf %70, %71 : vector<8x1xf32>
    %73 = math.rsqrt %72 : vector<8x1xf32>
    %74 = vector.broadcast %73 : vector<8x1xf32> to vector<8x128xf32>
    %75 = arith.mulf %65, %74 : vector<8x128xf32>
    %76 = arith.mulf %75, %3 : vector<8x128xf32>
    %77 = arith.addf %76, %6 : vector<8x128xf32>
    %c0_36 = arith.constant 0 : index
    %c256_37 = arith.constant 256 : index
    %78 = vector.load %arg6[%c0_36, %c256_37] : memref<8x512xf32, #tpu.memory_space<vmem>>, vector<8x128xf32>
    tpu.vector_store %arg6[%c0_36, %c256_37], %77 {strides = array<i32>} : memref<8x512xf32, #tpu.memory_space<vmem>>, vector<8x128xf32>,
    %c0_38 = arith.constant 0 : index
    %c384 = arith.constant 384 : index
    %79 = vector.load %arg2[%c0_38, %c384] : memref<128x512xbf16, #tpu.memory_space<vmem>>, vector<128x128xbf16>
    %cst_39 = arith.constant dense<0.000000e+00> : vector<8x128xf32>
    %80 = tpu.matmul %0, %79, %cst_39 {dimension_numbers = #tpu.dot_dimension_numbers<[1], [0], [0], [1], [0, 0, 1, 1], [], []>} : vector<8x128xbf16>, vector<128x128xbf16>, vector<8x128xf32> -> vector<8x128xf32>
    %c0_40 = arith.constant 0 : index
    %c384_41 = arith.constant 384 : index
    %81 = vector.load %arg3[%c0_40, %c384_41] : memref<1x512xf32, #tpu.memory_space<vmem>>, vector<1x128xf32>
    %82 = vector.broadcast %81 : vector<1x128xf32> to vector<8x128xf32>
    %83 = arith.addf %80, %82 : vector<8x128xf32>
    %cst_42 = arith.constant dense<0.000000e+00> : vector<8xf32>
    %84 = vector.multi_reduction <add>, %83, %cst_42 [1] : vector<8x128xf32> to vector<8xf32>
    %85 = vector.shape_cast %84 : vector<8xf32> to vector<8x1xf32>
    %cst_43 = arith.constant 7.812500e-03 : f32
    %86 = vector.broadcast %cst_43 : f32 to vector<8x1xf32>
    %87 = arith.mulf %85, %86 : vector<8x1xf32>
    %88 = vector.broadcast %87 : vector<8x1xf32> to vector<8x128xf32>
    %89 = arith.subf %83, %88 : vector<8x128xf32>
    %90 = arith.mulf %89, %89 : vector<8x128xf32>
    %cst_44 = arith.constant dense<0.000000e+00> : vector<8xf32>
    %91 = vector.multi_reduction <add>, %90, %cst_44 [1] : vector<8x128xf32> to vector<8xf32>
    %92 = vector.shape_cast %91 : vector<8xf32> to vector<8x1xf32>
    %cst_45 = arith.constant 7.812500e-03 : f32
    %93 = vector.broadcast %cst_45 : f32 to vector<8x1xf32>
    %94 = arith.mulf %92, %93 : vector<8x1xf32>
    %cst_46 = arith.constant 9.99999974E-6 : f32
    %95 = vector.broadcast %cst_46 : f32 to vector<8x1xf32>
    %96 = arith.addf %94, %95 : vector<8x1xf32>
    %97 = math.rsqrt %96 : vector<8x1xf32>
    %98 = vector.broadcast %97 : vector<8x1xf32> to vector<8x128xf32>
    %99 = arith.mulf %89, %98 : vector<8x128xf32>
    %100 = arith.mulf %99, %3 : vector<8x128xf32>
    %101 = arith.addf %100, %6 : vector<8x128xf32>
    %c0_47 = arith.constant 0 : index
    %c384_48 = arith.constant 384 : index
    %102 = vector.load %arg6[%c0_47, %c384_48] : memref<8x512xf32, #tpu.memory_space<vmem>>, vector<8x128xf32>
    tpu.vector_store %arg6[%c0_47, %c384_48], %101 {strides = array<i32>} : memref<8x512xf32, #tpu.memory_space<vmem>>, vector<8x128xf32>,
    return
  }
  func.func @transform_0(%arg0: i32) -> (i32, i32) {
    %c0_i32 = arith.constant 0 : i32
    %c0_i32_0 = arith.constant 0 : i32
    %c0_i32_1 = arith.constant 0 : i32
    return %c0_i32, %c0_i32_0 : i32, i32
  }
  func.func @transform_1(%arg0: i32) -> (i32, i32) {
    %c0_i32 = arith.constant 0 : i32
    %c0_i32_0 = arith.constant 0 : i32
    return %c0_i32, %arg0 : i32, i32
  }
  func.func @transform_2(%arg0: i32) -> (i32, i32) {
    %c0_i32 = arith.constant 0 : i32
    %c0_i32_0 = arith.constant 0 : i32
    return %c0_i32, %arg0 : i32, i32
  }
  func.func @transform_3(%arg0: i32) -> (i32, i32) {
    %c0_i32 = arith.constant 0 : i32
    %c0_i32_0 = arith.constant 0 : i32
    %c0_i32_1 = arith.constant 0 : i32
    return %c0_i32, %c0_i32_0 : i32, i32
  }
  func.func @transform_4(%arg0: i32) -> (i32, i32) {
    %c0_i32 = arith.constant 0 : i32
    %c0_i32_0 = arith.constant 0 : i32
    %c0_i32_1 = arith.constant 0 : i32
    return %c0_i32, %c0_i32_0 : i32, i32
  }
  func.func @transform_5(%arg0: i32) -> (i32, i32) {
    %c0_i32 = arith.constant 0 : i32
    %c0_i32_0 = arith.constant 0 : i32
    return %c0_i32, %arg0 : i32, i32
  }
}

</mosaic_0001>

<bundles_post_ra>
// kernel: tpu_custom_call.1
= control target key start
LH: loop header
LB: loop body
LE: loop exit
PB: predicated region body
PF: predicated region fallthrough
CT: control target
= control target key end

     0   :  { %10 = vsyncpa [#allocation3], 0  ;;  %s990_s0 = inlined_call_operand.hbm [shape: bf16[8,128], index: 0, kind: input, shape index: {}]   ;;  %s991_s1 = inlined_call_operand.hbm [shape: bf16[128,512], index: 1, kind: input, shape index: {}]   ;;  %s992_s2 = inlined_call_operand.vmem [shape: f32[1,512], index: 2, kind: input, shape index: {}]   ;;  %s993_s3 = inlined_call_operand.vmem [shape: f32[1,128], index: 3, kind: input, shape index: {}]   ;;  %s994_s4 = inlined_call_operand.vmem [shape: f32[1,128], index: 4, kind: input, shape index: {}]   ;;  %s995_s5 = inlined_call_operand.hbm [shape: f32[8,512], index: 5, kind: output, shape index: {}]  }
   0x1   :  { %11 = vsyncpa [#allocation6], 0 }
   0x2   :  { %12 = vsyncpa [#allocation4], 0  ;;  %s852_s18 = smov [#allocation2]   ;;  %s853_s20 = smov [#allocation5]  }
   0x3   :  { %s19_s19 = sshll.u32 %s852_s18, 4  ;;  %s28_s21 = sshll.u32 %s853_s20, 4  ;;  %s20_s19 = int_to_ptr.vmem [resolvable:$true] %s19_s19  ;;  %s889_s21 = int_to_ptr.vmem [resolvable:$true] %s28_s21 }
   0x4   :  { %s780_s24 = scalar_lea.hbm %s990_s0, 64 }
   0x5   :  { %p781_p0 = scmp.ne.s32.totalorder %s990_s0, %s780_s24  ;;  %p784_p1 = scmp.lt.u32.totalorder %s780_s24, %s990_s0 }
   0x7   :  { %p786_p2 = pnand %p784_p1, %p781_p0 }
   0x9   :  { %789 = shalt.err (!%p786_p2)
}
   0xa   :  { %s790_s29 = scalar_lea.vmem %s20_s19, 64  ;;  %p795_p4 = scmp.lt.s32.totalorder %s20_s19, %s20_s19 }
   0xb   :  { %p791_p3 = scmp.ne.s32.totalorder %s20_s19, %s790_s29  ;;  %p796_p5 = scmp.lt.s32.totalorder %s790_s29, %s790_s29 }
   0xd   :  { %p797_p6 = por %p796_p5, %p795_p4 }
   0xf   :  { %p798_p7 = pnand %p797_p6, %p791_p3 }
  0x11   :  { %801 = shalt.err (!%p798_p7)
}
  0x12   :  { %22 = dma.hbm_to_vmem [thread:$0]  %s990_s0, 64, %s20_s19, [#allocation3]  }
  0x13   :  { %s802_s9 = scalar_lea.hbm %s991_s1, 4096 }
  0x14   :  { %p803_p8 = scmp.ne.s32.totalorder %s991_s1, %s802_s9  ;;  %p806_p9 = scmp.lt.u32.totalorder %s802_s9, %s991_s1 }
  0x16   :  { %p808_p10 = pnand %p806_p9, %p803_p8 }
  0x18   :  { %811 = shalt.err (!%p808_p10)
}
  0x19   :  { %s812_s14 = scalar_lea.vmem %s889_s21, 4096  ;;  %p817_p12 = scmp.lt.s32.totalorder %s889_s21, %s889_s21 }
  0x1a   :  { %p813_p11 = scmp.ne.s32.totalorder %s889_s21, %s812_s14  ;;  %p818_p13 = scmp.lt.s32.totalorder %s812_s14, %s812_s14 }
  0x1c   :  { %p819_p0 = por %p818_p13, %p817_p12 }
  0x1e   :  { %p820_p1 = pnand %p819_p0, %p813_p11 }
  0x20   :  { %823 = shalt.err (!%p820_p1)
}
  0x21   :  { %s854_s0 = smov 256   ;;  %s855_s15 = smov 16  }
  0x22   :  { %34 = dma.hbm_to_vmem [thread:$0]  %s991_s1, 4096, %s889_s21, [#allocation6], %s854_s0, %s854_s0, %s855_s15  }
  0x23   :  { %846 = dma.done.wait [#allocation3], 64  }
  0x24   :  { %847 = vsyncadd [#allocation3], 4294967232 }
  0x25   :  { %848 = dma.done.wait [#allocation6], 4096  }
  0x26   :  { %849 = vsyncadd [#allocation6], 4294963200  ;;  %v856_v0 = vmov 0.0   ;;  %vm857_vm0 = vmmov 0   ;;  %v740_v1 = vld [vmem:[#allocation5] ss:$16 sps:$4 sm:$0xff]  }
  0x27   :  { %653 = vmatprep.subr.bf16.mxu0 %v856_v0  ;;  %673 = vmatprep.subr.bf16.mxu1 %v856_v0  ;;  %v741_v2 = vld [vmem:[#allocation5 + $0x4] ss:$16 sps:$4 sm:$0xff]   ;;  %v742_v3 = vld [vmem:[#allocation5 + $0x20] ss:$16 sps:$4 sm:$0xff]   ;;  %v48_v17 = vld [vmem:[#allocation2] sm:$0xf] }
  0x28   :  { %669 = vmatprep.mubr.msk.bf16.mxu0 %vm857_vm0, %v856_v0  ;;  %689 = vmatprep.mubr.msk.bf16.mxu1 %vm857_vm0, %v856_v0  ;;  %v743_v4 = vld [vmem:[#allocation5 + $0x24] ss:$16 sps:$4 sm:$0xff]   ;;  %v744_v5 = vld [vmem:[#allocation5 + $0x40] ss:$16 sps:$4 sm:$0xff]   ;;  %v756_v18 = vld [vmem:[#allocation5 + $0x8] ss:$16 sps:$4 sm:$0xff]  }
  0x29   :  { %654 = vmatpush3.bf16.msra.mxu0 %v740_v1  ;;  %674 = vmatpush3.bf16.msra.mxu1 %v741_v2  ;;  %v745_v6 = vld [vmem:[#allocation5 + $0x44] ss:$16 sps:$4 sm:$0xff]   ;;  %v746_v7 = vld [vmem:[#allocation5 + $0x60] ss:$16 sps:$4 sm:$0xff]   ;;  %v757_v19 = vld [vmem:[#allocation5 + $0xc] ss:$16 sps:$4 sm:$0xff]  }
  0x2a   :  { %655 = vmatprep.subr.bf16.mxu0 %v856_v0  ;;  %675 = vmatprep.subr.bf16.mxu1 %v856_v0  ;;  %v747_v8 = vld [vmem:[#allocation5 + $0x64] ss:$16 sps:$4 sm:$0xff]   ;;  %v748_v9 = vld [vmem:[#allocation5 + $0x80] ss:$16 sps:$4 sm:$0xff]   ;;  %v758_v20 = vld [vmem:[#allocation5 + $0x28] ss:$16 sps:$4 sm:$0xff]  }
  0x2b   :  { %v749_v10 = vld [vmem:[#allocation5 + $0x84] ss:$16 sps:$4 sm:$0xff]   ;;  %v750_v11 = vld [vmem:[#allocation5 + $0xa0] ss:$16 sps:$4 sm:$0xff]   ;;  %v759_v21 = vld [vmem:[#allocation5 + $0x2c] ss:$16 sps:$4 sm:$0xff]  }
  0x2c   :  { %v751_v12 = vld [vmem:[#allocation5 + $0xa4] ss:$16 sps:$4 sm:$0xff]   ;;  %v752_v13 = vld [vmem:[#allocation5 + $0xc0] ss:$16 sps:$4 sm:$0xff]   ;;  %v760_v22 = vld [vmem:[#allocation5 + $0x48] ss:$16 sps:$4 sm:$0xff]  }
  0x2d   :  { %656 = vmatpush3.bf16.msra.mxu0 %v742_v3  ;;  %676 = vmatpush3.bf16.msra.mxu1 %v743_v4  ;;  %v753_v14 = vld [vmem:[#allocation5 + $0xc4] ss:$16 sps:$4 sm:$0xff]   ;;  %v754_v15 = vld [vmem:[#allocation5 + $0xe0] ss:$16 sps:$4 sm:$0xff]   ;;  %v761_v23 = vld [vmem:[#allocation5 + $0x4c] ss:$16 sps:$4 sm:$0xff]  }
  0x2e   :  { %657 = vmatprep.subr.bf16.mxu0 %v856_v0  ;;  %677 = vmatprep.subr.bf16.mxu1 %v856_v0  ;;  %v755_v16 = vld [vmem:[#allocation5 + $0xe4] ss:$16 sps:$4 sm:$0xff]   ;;  %v762_v24 = vld [vmem:[#allocation5 + $0x68] ss:$16 sps:$4 sm:$0xff]   ;;  %v763_v25 = vld [vmem:[#allocation5 + $0x6c] ss:$16 sps:$4 sm:$0xff]  }
  0x2f   :  { %v764_v26 = vld [vmem:[#allocation5 + $0x88] ss:$16 sps:$4 sm:$0xff]   ;;  %v765_v27 = vld [vmem:[#allocation5 + $0x8c] ss:$16 sps:$4 sm:$0xff]  }
  0x30   :  { %v766_v28 = vld [vmem:[#allocation5 + $0xa8] ss:$16 sps:$4 sm:$0xff]   ;;  %v767_v29 = vld [vmem:[#allocation5 + $0xac] ss:$16 sps:$4 sm:$0xff]  }
  0x31   :  { %658 = vmatpush3.bf16.msra.mxu0 %v744_v5  ;;  %678 = vmatpush3.bf16.msra.mxu1 %v745_v6  ;;  %v768_v30 = vld [vmem:[#allocation5 + $0xc8] ss:$16 sps:$4 sm:$0xff]   ;;  %v769_v31 = vld [vmem:[#allocation5 + $0xcc] ss:$16 sps:$4 sm:$0xff]  }
  0x32   :  { %659 = vmatprep.subr.bf16.mxu0 %v856_v0  ;;  %679 = vmatprep.subr.bf16.mxu1 %v856_v0  ;;  %v770_v32 = vld [vmem:[#allocation5 + $0xe8] ss:$16 sps:$4 sm:$0xff]   ;;  %v771_v33 = vld [vmem:[#allocation5 + $0xec] ss:$16 sps:$4 sm:$0xff]  }
  0x33   :  { %v581_v34 = vld [vmem:[%s992_s2] ss:$0 sm:$0xff]  ;;  %v590_v36 = vld [vmem:[%s992_s2 + $0x1] ss:$0 sm:$0xff]  ;;  %v599_v46 = vld [vmem:[%s992_s2 + $0x2] ss:$0 sm:$0xff] }
  0x34   :  { %v608_v48 = vld [vmem:[%s992_s2 + $0x3] ss:$0 sm:$0xff] }
  0x35   :  { %660 = vmatpush3.bf16.msra.mxu0 %v746_v7  ;;  %680 = vmatpush3.bf16.msra.mxu1 %v747_v8 }
  0x36   :  { %661 = vmatprep.subr.bf16.mxu0 %v856_v0  ;;  %681 = vmatprep.subr.bf16.mxu1 %v856_v0 }
  0x39   :  { %662 = vmatpush3.bf16.msra.mxu0 %v748_v9  ;;  %682 = vmatpush3.bf16.msra.mxu1 %v749_v10 }
  0x3a   :  { %663 = vmatprep.subr.bf16.mxu0 %v856_v0  ;;  %683 = vmatprep.subr.bf16.mxu1 %v856_v0 }
  0x3d   :  { %664 = vmatpush3.bf16.msra.mxu0 %v750_v11  ;;  %684 = vmatpush3.bf16.msra.mxu1 %v751_v12 }
  0x3e   :  { %665 = vmatprep.subr.bf16.mxu0 %v856_v0  ;;  %685 = vmatprep.subr.bf16.mxu1 %v856_v0 }
  0x41   :  { %666 = vmatpush3.bf16.msra.mxu0 %v752_v13  ;;  %686 = vmatpush3.bf16.msra.mxu1 %v753_v14 }
  0x42   :  { %667 = vmatprep.subr.bf16.mxu0 %v856_v0  ;;  %687 = vmatprep.subr.bf16.mxu1 %v856_v0 }
  0x45   :  { %668 = vmatpush3.bf16.msra.mxu0 %v754_v15  ;;  %688 = vmatpush3.bf16.msra.mxu1 %v755_v16 }
  0x46   :  { %693 = vmatprep.subr.bf16.mxu0 %v856_v0  ;;  %713 = vmatprep.subr.bf16.mxu1 %v856_v0 }
  0x48   :  { %670 = vmatmul.mubr.bf16.vlgmr.msra.gmra.mrb[0].mxu0 %v48_v17  ;;  %690 = vmatmul.mubr.bf16.vlgmr.msra.gmra.mrb[0].mxu1 %v48_v17 }
  0x49   :  { %694 = vmatpush3.bf16.msra.mxu0 %v756_v18  ;;  %714 = vmatpush3.bf16.msra.mxu1 %v757_v19  ;;  %v580_v19 = vld [vmem:[%s994_s4] ss:$0 sm:$0xff] }
  0x4a   :  { %695 = vmatprep.subr.bf16.mxu0 %v856_v0  ;;  %715 = vmatprep.subr.bf16.mxu1 %v856_v0 }
  0x4b   :  { %709 = vmatprep.mubr.msk.bf16.mxu0 %vm857_vm0, %v856_v0  ;;  %729 = vmatprep.mubr.msk.bf16.mxu1 %vm857_vm0, %v856_v0 }
  0x4d   :  { %696 = vmatpush3.bf16.msra.mxu0 %v758_v20  ;;  %716 = vmatpush3.bf16.msra.mxu1 %v759_v21 }
  0x4e   :  { %697 = vmatprep.subr.bf16.mxu0 %v856_v0  ;;  %717 = vmatprep.subr.bf16.mxu1 %v856_v0 }
  0x51   :  { %698 = vmatpush3.bf16.msra.mxu0 %v760_v22  ;;  %718 = vmatpush3.bf16.msra.mxu1 %v761_v23 }
  0x52   :  { %699 = vmatprep.subr.bf16.mxu0 %v856_v0  ;;  %719 = vmatprep.subr.bf16.mxu1 %v856_v0 }
  0x55   :  { %700 = vmatpush3.bf16.msra.mxu0 %v762_v24  ;;  %720 = vmatpush3.bf16.msra.mxu1 %v763_v25 }
  0x56   :  { %701 = vmatprep.subr.bf16.mxu0 %v856_v0  ;;  %721 = vmatprep.subr.bf16.mxu1 %v856_v0 }
  0x59   :  { %702 = vmatpush3.bf16.msra.mxu0 %v764_v26  ;;  %722 = vmatpush3.bf16.msra.mxu1 %v765_v27 }
  0x5a   :  { %703 = vmatprep.subr.bf16.mxu0 %v856_v0  ;;  %723 = vmatprep.subr.bf16.mxu1 %v856_v0 }
  0x5d   :  { %704 = vmatpush3.bf16.msra.mxu0 %v766_v28  ;;  %724 = vmatpush3.bf16.msra.mxu1 %v767_v29 }
  0x5e   :  { %705 = vmatprep.subr.bf16.mxu0 %v856_v0  ;;  %725 = vmatprep.subr.bf16.mxu1 %v856_v0 }
  0x61   :  { %706 = vmatpush3.bf16.msra.mxu0 %v768_v30  ;;  %726 = vmatpush3.bf16.msra.mxu1 %v769_v31 }
  0x62   :  { %707 = vmatprep.subr.bf16.mxu0 %v856_v0  ;;  %727 = vmatprep.subr.bf16.mxu1 %v856_v0 }
  0x65   :  { %708 = vmatpush3.bf16.msra.mxu0 %v770_v32  ;;  %728 = vmatpush3.bf16.msra.mxu1 %v771_v33 }
  0x68   :  { %710 = vmatmul.mubr.bf16.vlgmr.msra.gmra.mrb[4].mxu0 %v48_v17  ;;  %730 = vmatmul.mubr.bf16.vlgmr.msra.gmra.mrb[4].mxu1 %v48_v17  ;;  %v579_v17 = vld [vmem:[%s993_s3] ss:$0 sm:$0xff]  ;;  %s858_s3 = smov [#allocation7]  }
  0x69   :  { %s569_s4 = sshll.u32 %s858_s3, 4  ;;  %s570_s4 = int_to_ptr.vmem [resolvable:$true] %s569_s4 }
  0x6a   :  { %s824_s28 = scalar_lea.vmem %s570_s4, 512  ;;  %p829_p3 = scmp.lt.s32.totalorder %s570_s4, %s570_s4 }
  0x6b   :  { %p825_p2 = scmp.ne.s32.totalorder %s570_s4, %s824_s28  ;;  %p830_p4 = scmp.lt.s32.totalorder %s824_s28, %s824_s28 }
  0x6d   :  { %p831_p5 = por %p830_p4, %p829_p3 }
  0x6f   :  { %p832_p6 = pnand %p831_p5, %p825_p2 }
 0x11b   :  { %v168_v35 = vpop.f32.mrb[0].mxu0  ;;  %v293_v39 = vpop.f32.mrb[0].mxu1 }
 0x11c   :  { %v169_v37 = vadd.f32 %v581_v34, %v168_v35  ;;  %v671_v38 = vpop.f32.mrb[1].mxu0  ;;  %v691_v41 = vpop.f32.mrb[1].mxu1  ;;  %v294_v42 = vadd.f32 %v590_v36, %v293_v39 }
 0x11d   :  { %v171_v40 = vpop.f32.mrb[2].mxu0  ;;  %v296_v44 = vpop.f32.mrb[2].mxu1 }
 0x11e   :  { %174 = vadd.xlane.f32.xlu0 %v169_v37  ;;  %v672_v43 = vpop.f32.mrb[3].mxu0  ;;  %v692_v45 = vpop.f32.mrb[3].mxu1 }
 0x122   :  { %299 = vadd.xlane.f32.xlu0 %v294_v42 }
 0x13b   :  { %v418_v47 = vpop.f32.mrb[4].mxu0  ;;  %v543_v51 = vpop.f32.mrb[4].mxu1 }
 0x13c   :  { %v419_v49 = vadd.f32 %v599_v46, %v418_v47  ;;  %v711_v50 = vpop.f32.mrb[5].mxu0  ;;  %v731_v53 = vpop.f32.mrb[5].mxu1  ;;  %v544_v54 = vadd.f32 %v608_v48, %v543_v51 }
 0x13d   :  { %v421_v52 = vpop.f32.mrb[6].mxu0  ;;  %v546_v55 = vpop.f32.mrb[6].mxu1 }
 0x13e   :  { %424 = vadd.xlane.f32.xlu1 %v419_v49  ;;  %v712_v56 = vpop.f32.mrb[7].mxu0  ;;  %v732_v57 = vpop.f32.mrb[7].mxu1 }
 0x142   :  { %549 = vadd.xlane.f32.xlu1 %v544_v54 }
 0x1ab   :  { %v175_v58 = vpop.xlane.xlu0 %174 }
 0x1ac   :  { %v176_v59 = vmul.f32 0.0078125, %v175_v58 }
 0x1ae   :  { %v177_v60 = vsub.f32 %v169_v37, %v176_v59 }
 0x1af   :  { %v300_v61 = vpop.xlane.xlu0 %299 }
 0x1b0   :  { %v301_v62 = vmul.f32 0.0078125, %v300_v61  ;;  %v178_v63 = vmul.f32 %v177_v60, %v177_v60 }
 0x1b2   :  { %v302_v0 = vsub.f32 %v294_v42, %v301_v62  ;;  %179 = vadd.xlane.f32.xlu0 %v178_v63 }
 0x1b4   :  { %v303_v1 = vmul.f32 %v302_v0, %v302_v0 }
 0x1b6   :  { %304 = vadd.xlane.f32.xlu1 %v303_v1 }
 0x1cb   :  { %v425_v2 = vpop.xlane.xlu1 %424 }
 0x1cc   :  { %v426_v3 = vmul.f32 0.0078125, %v425_v2 }
 0x1ce   :  { %v427_v4 = vsub.f32 %v419_v49, %v426_v3 }
 0x1cf   :  { %v550_v5 = vpop.xlane.xlu1 %549 }
 0x1d0   :  { %v551_v6 = vmul.f32 0.0078125, %v550_v5  ;;  %v428_v7 = vmul.f32 %v427_v4, %v427_v4 }
 0x1d2   :  { %v552_v8 = vsub.f32 %v544_v54, %v551_v6  ;;  %429 = vadd.xlane.f32.xlu0 %v428_v7 }
 0x1d4   :  { %v553_v9 = vmul.f32 %v552_v8, %v552_v8 }
 0x1d6   :  { %554 = vadd.xlane.f32.xlu1 %v553_v9 }
 0x23f   :  { %v180_v10 = vpop.xlane.xlu0 %179 }
 0x240   :  { %v181_v11 = vmul.f32 0.0078125, %v180_v10 }
 0x242   :  { %v182_v12 = vadd.f32 1e-05, %v181_v11 }
 0x243   :  { %v305_v13 = vpop.xlane.xlu1 %304 }
 0x244   :  { %772 = vrsqrt.f32 %v182_v12  ;;  %v306_v14 = vmul.f32 0.0078125, %v305_v13 }
 0x246   :  { %v307_v15 = vadd.f32 1e-05, %v306_v14 }
 0x248   :  { %774 = vrsqrt.f32 %v307_v15 }
 0x24e   :  { %v773_v16 = vpop.eup %772 }
 0x24f   :  { %v184_v18 = vmul.f32 %v773_v16, %v177_v60 }
 0x251   :  { %v185_v20 = vmul.f32 %v579_v17, %v184_v18 }
 0x252   :  { %v775_v21 = vpop.eup %774 }
 0x253   :  { %v309_v22 = vmul.f32 %v775_v21, %v302_v0  ;;  %v186_v23 = vadd.f32 %v580_v19, %v185_v20 }
 0x255   :  { %187 = vst [vmem:[#allocation7] sm:$0xff] %v186_v23  ;;  %v310_v24 = vmul.f32 %v579_v17, %v309_v22 }
 0x257   :  { %v311_v25 = vadd.f32 %v580_v19, %v310_v24 }
 0x259   :  { %312 = vst [vmem:[#allocation7 + $0x8] sm:$0xff] %v311_v25 }
 0x25f   :  { %v430_v26 = vpop.xlane.xlu0 %429 }
 0x260   :  { %v431_v27 = vmul.f32 0.0078125, %v430_v26 }
 0x262   :  { %v432_v28 = vadd.f32 1e-05, %v431_v27 }
 0x263   :  { %v555_v29 = vpop.xlane.xlu1 %554 }
 0x264   :  { %776 = vrsqrt.f32 %v432_v28  ;;  %v556_v30 = vmul.f32 0.0078125, %v555_v29 }
 0x266   :  { %v557_v31 = vadd.f32 1e-05, %v556_v30 }
 0x268   :  { %778 = vrsqrt.f32 %v557_v31 }
 0x26e   :  { %v777_v32 = vpop.eup %776 }
 0x26f   :  { %v434_v33 = vmul.f32 %v777_v32, %v427_v4 }
 0x271   :  { %v435_v34 = vmul.f32 %v579_v17, %v434_v33 }
 0x272   :  { %v779_v35 = vpop.eup %778 }
 0x273   :  { %v559_v36 = vmul.f32 %v779_v35, %v552_v8  ;;  %v436_v37 = vadd.f32 %v580_v19, %v435_v34 }
 0x275   :  { %437 = vst [vmem:[#allocation7 + $0x10] sm:$0xff] %v436_v37  ;;  %v560_v38 = vmul.f32 %v579_v17, %v559_v36 }
 0x277   :  { %v561_v39 = vadd.f32 %v580_v19, %v560_v38 }
 0x279   :  { %562 = vst [vmem:[#allocation7 + $0x18] sm:$0xff] %v561_v39 }
 0x27a   :  { %835 = shalt.err (!%p832_p6)
}
 0x27b   :  { %s836_s6 = scalar_lea.hbm %s995_s5, 512 }
 0x27c   :  { %p837_p7 = scmp.ne.s32.totalorder %s995_s5, %s836_s6  ;;  %p840_p8 = scmp.lt.u32.totalorder %s836_s6, %s995_s5 }
 0x27e   :  { %p842_p9 = pnand %p840_p8, %p837_p7 }
 0x280   :  { %845 = shalt.err (!%p842_p9)
}
 0x281   :  { %572 = dma.vmem_to_hbm [thread:$0]  %s570_s4, 512, %s995_s5, [#allocation4]  }
 0x282   :  { %850 = dma.done.wait [#allocation4], 512  }
 0x283   :  { %851 = vsyncadd [#allocation4], 4294966784 }
 0x284   :  { %576 = vsyncpa [#allocation3], 1 }
 0x285   :  { %577 = vsyncpa [#allocation6], 1 }
 0x286   :  { %578 = vsyncpa [#allocation4], 1 }

</bundles_post_ra>
